<compile_context>
chip_gen: v7x
topology: tpu7x:2x2x1
jax: 0.10.0
libtpu: 0.0.40
codegen_flags: <defaults>
</compile_context>

<pallas_src>
import functools

import jax
import jax.numpy as jnp
from jax.experimental import pallas as pl
from jax.experimental.pallas import tpu as pltpu


def _round_up(n, m):
    return ((n + m - 1) // m) * m


def _gather_kernel(ts_ref, xfull_ref, utrj_ref, xout_ref, uout_ref, *, T):
    """Gather TQ trajectory rows from VMEM-resident padded trajectories.

    ts_ref    : VMEM (TQ, 1)         int32   query time indices for this tile
    xfull_ref : VMEM (T_PAD, X_PAD)  f32     cat(x0, xnext_trj), zero-padded
    utrj_ref  : VMEM (T_PAD, U_PAD)  f32     u_trj, zero-padded
    xout_ref  : VMEM (TQ, X_PAD)     f32     lane-dense:  x_full[t]
    uout_ref  : VMEM (TQ, U_PAD)     f32     lane-dense:  u_trj[min(t, T-1)]
    """
    idx = ts_ref[...]                              # (TQ, 1) int32
    idx_x = jnp.clip(idx, 0, T)                    # valid rows of x_full
    idx_u = jnp.clip(idx, 0, T - 1)                # clamp t == T (masked host-side)

    tq = xout_ref.shape[0]
    t_pad = xfull_ref.shape[0]
    iota = jax.lax.broadcasted_iota(jnp.int32, (tq, t_pad), 1)

    onehot_x = (idx_x == iota).astype(jnp.float32)  # (TQ, T_PAD)
    onehot_u = (idx_u == iota).astype(jnp.float32)

    # One-hot matmul gather on the MXU; one full-width unmasked store per output.
    xout_ref[...] = jnp.dot(onehot_x, xfull_ref[...],
                            preferred_element_type=jnp.float32)
    uout_ref[...] = jnp.dot(onehot_u, utrj_ref[...],
                            preferred_element_type=jnp.float32)


def _make_forward_batch(T, t_pad, x_pad, u_pad, t_batch_pad, tq):
    """Build a jitted pallas_call gathering t_batch_pad rows, TQ per grid step."""
    num_tiles = t_batch_pad // tq
    # Don't split a tiny, overhead-bound grid across v7x's two TensorCores.
    sem = "parallel" if num_tiles >= 8 else "arbitrary"

    kernel = functools.partial(_gather_kernel, T=T)

    call = pl.pallas_call(
        kernel,
        out_shape=(
            jax.ShapeDtypeStruct((t_batch_pad, x_pad), jnp.float32),
            jax.ShapeDtypeStruct((t_batch_pad, u_pad), jnp.float32),
        ),
        grid_spec=pltpu.PrefetchScalarGridSpec(
            num_scalar_prefetch=0,
            grid=(num_tiles,),
            in_specs=[
                # Query indices: one (TQ, 1) tile per grid step.
                pl.BlockSpec((tq, 1), lambda i: (i, 0)),
                # Resident trajectories: constant block index -> DMA'd once.
                pl.BlockSpec((t_pad, x_pad), lambda i: (0, 0)),
                pl.BlockSpec((t_pad, u_pad), lambda i: (0, 0)),
            ],
            out_specs=(
                pl.BlockSpec((tq, x_pad), lambda i: (i, 0)),
                pl.BlockSpec((tq, u_pad), lambda i: (i, 0)),
            ),
        ),
        compiler_params=pltpu.CompilerParams(dimension_semantics=(sem,)),
    )
    return jax.jit(call)


class IVPTrajectoryPallas:
    """JAX/Pallas port of score_po.trajectory.IVPTrajectory."""

    def __init__(self, dim_x, dim_u, T, x0, key):
        self.dim_x = dim_x
        self.dim_u = dim_u
        self.T = T
        self.x0 = jnp.asarray(x0, jnp.float32)
        # nn.Parameter(torch.zeros(...)) in the module; initialize
        # deterministically but non-zero so the gather is observable.
        k1, k2 = jax.random.split(key)
        self.u_trj = jax.random.normal(k1, (T, dim_u), dtype=jnp.float32)
        self.xnext_trj = jax.random.normal(k2, (T, dim_x), dtype=jnp.float32)

        # Padded, lane/sublane-aligned layouts cached once (rebuilt only via setters).
        self._x_pad = _round_up(dim_x, 128)
        self._u_pad = _round_up(dim_u, 128)
        self._t_pad = _round_up(T + 1, 8)
        self._rebuild_cached()
        self._fwd_cache = {}  # (t_batch_pad, tq) -> compiled pallas_call

    # --- cached padded trajectories ---------------------------------------
    def _rebuild_cached(self):
        x_full = jnp.concatenate([self.x0[None, :], self.xnext_trj], axis=0)
        self._x_full = x_full  # (T+1, dim_x), unpadded, for host-side use
        self._x_full_pad = (
            jnp.zeros((self._t_pad, self._x_pad), jnp.float32)
            .at[: self.T + 1, : self.dim_x].set(x_full)
        )
        self._u_trj_pad = (
            jnp.zeros((self._t_pad, self._u_pad), jnp.float32)
            .at[: self.T, : self.dim_u].set(self.u_trj)
        )

    def set_xnext_trj(self, xnext_trj):
        self.xnext_trj = jnp.asarray(xnext_trj, jnp.float32)
        self._rebuild_cached()

    def set_u_trj(self, u_trj):
        self.u_trj = jnp.asarray(u_trj, jnp.float32)
        self._rebuild_cached()

    def get_full_trajectory(self):
        return self._x_full, self.u_trj

    # --- batched Pallas gather ---------------------------------------------
    def forward_batch(self, ts):
        """ts int32[n] -> (x[n, dim_x], u[n, dim_u]).

        Rows with t == T carry the clamped row u_trj[T-1] (the scalar forward()
        masks them to None, matching PyTorch).
        """
        ts = jnp.asarray(ts, jnp.int32).reshape(-1)
        n = int(ts.shape[0])
        tq = min(_round_up(n, 8), 256)        # queries per grid step
        n_pad = _round_up(n, tq)

        key = (n_pad, tq)
        fwd = self._fwd_cache.get(key)
        if fwd is None:
            fwd = _make_forward_batch(self.T, self._t_pad, self._x_pad,
                                      self._u_pad, n_pad, tq)
            self._fwd_cache[key] = fwd

        ts_pad = jnp.zeros((n_pad, 1), jnp.int32).at[:n, 0].set(ts)
        x_out, u_out = fwd(ts_pad, self._x_full_pad, self._u_trj_pad)
        return x_out[:n, : self.dim_x], u_out[:n, : self.dim_u]

    # --- scalar forward: static Python t, no kernel needed ------------------
    def forward(self, t):
        if t == 0:
            return self.x0, self.u_trj[0]
        elif t == self.T:
            return self.xnext_trj[self.T - 1], None
        else:
            return self.xnext_trj[t - 1], self.u_trj[t]


def _reference_forward(traj, t):
    if t == 0:
        return traj.x0, traj.u_trj[t]
    elif t == traj.T:
        return traj.xnext_trj[traj.T - 1], None
    else:
        return traj.xnext_trj[t - 1], traj.u_trj[t]


if __name__ == "__main__":
    dim_x, dim_u, T = 4, 3, 8
    key = jax.random.PRNGKey(0)
    kx0, kparams, kts = jax.random.split(key, 3)
    x0 = jax.random.normal(kx0, (dim_x,), dtype=jnp.float32)

    traj = IVPTrajectoryPallas(dim_x, dim_u, T, x0, kparams)

    ok = True

    # Single-step queries (matches the PyTorch forward signature exactly).
    for t in range(T + 1):
        x, u = traj.forward(t)
        x = jax.block_until_ready(x)
        x_ref, u_ref = _reference_forward(traj, t)
        ok &= bool(jnp.allclose(x, x_ref, atol=1e-6))
        if t == T:
            ok &= u is None
        else:
            u = jax.block_until_ready(u)
            ok &= bool(jnp.allclose(u, u_ref, atol=1e-6))

    x_full_ref, u_trj_ref = traj.get_full_trajectory()

    # Batched query: all time steps in one Pallas launch.
    ts = jnp.arange(T + 1, dtype=jnp.int32)
    x_b, u_b = traj.forward_batch(ts)
    x_b = jax.block_until_ready(x_b)
    u_b = jax.block_until_ready(u_b)
    ok &= bool(jnp.allclose(x_b, x_full_ref, atol=1e-6))
    ok &= bool(jnp.allclose(u_b[:T], u_trj_ref, atol=1e-6))        # t < T rows
    ok &= bool(jnp.allclose(u_b[T], u_trj_ref[T - 1], atol=1e-6))  # clamped row at t == T

    # Larger batched query (exercises grid > 1 and the padding path).
    ts_big = jax.random.randint(kts, (300,), 0, T + 1, dtype=jnp.int32)
    x_bb, u_bb = traj.forward_batch(ts_big)
    x_bb = jax.block_until_ready(x_bb)
    u_bb = jax.block_until_ready(u_bb)
    x_exp = jnp.take(x_full_ref, ts_big, axis=0)
    u_exp = jnp.take(u_trj_ref, jnp.minimum(ts_big, T - 1), axis=0)
    ok &= bool(jnp.allclose(x_bb, x_exp, atol=1e-6))
    ok &= bool(jnp.allclose(u_bb, u_exp, atol=1e-6))

    if ok:
        print("KERNEL_OK")
    else:
        print("KERNEL_MISMATCH")
</pallas_src>

<mosaic_0001>
module attributes {stable_mosaic.version = 11 : i64} {
  func.func @_gather_kernel(%arg0: i32, %arg1: memref<16x1xi32, #tpu.memory_space<vmem>>, %arg2: memref<16x128xf32, #tpu.memory_space<vmem>>, %arg3: memref<16x128xf32, #tpu.memory_space<vmem>>, %arg4: memref<16x128xf32, #tpu.memory_space<vmem>>, %arg5: memref<16x128xf32, #tpu.memory_space<vmem>>) attributes {dimension_semantics = [#tpu.dimension_semantics<arbitrary>], iteration_bounds = array<i64: 1>, scalar_prefetch = 0 : i64, scratch_operands = 0 : i64, tpu.core_type = #tpu.core_type<tc>, window_params = [{transform_indices = @transform_0, window_bounds = array<i64: 16, 1>}, {pipeline_mode = #tpu.pipeline_mode<synchronous>, transform_indices = @transform_1, window_bounds = array<i64: 16, 128>}, {pipeline_mode = #tpu.pipeline_mode<synchronous>, transform_indices = @transform_2, window_bounds = array<i64: 16, 128>}, {transform_indices = @transform_3, window_bounds = array<i64: 16, 128>}, {transform_indices = @transform_4, window_bounds = array<i64: 16, 128>}]} {
    %c0 = arith.constant 0 : index
    %c0_0 = arith.constant 0 : index
    %0 = vector.load %arg1[%c0, %c0_0] : memref<16x1xi32, #tpu.memory_space<vmem>>, vector<16x1xi32>
    %c0_i32 = arith.constant 0 : i32
    %c8_i32 = arith.constant 8 : i32
    %1 = vector.broadcast %c0_i32 : i32 to vector<16x1xi32>
    %2 = arith.maxsi %1, %0 : vector<16x1xi32>
    %3 = vector.broadcast %c8_i32 : i32 to vector<16x1xi32>
    %4 = arith.minsi %3, %2 : vector<16x1xi32>
    %c0_i32_1 = arith.constant 0 : i32
    %c7_i32 = arith.constant 7 : i32
    %5 = vector.broadcast %c0_i32_1 : i32 to vector<16x1xi32>
    %6 = arith.maxsi %5, %0 : vector<16x1xi32>
    %7 = vector.broadcast %c7_i32 : i32 to vector<16x1xi32>
    %8 = arith.minsi %7, %6 : vector<16x1xi32>
    %9 = tpu.iota {dimensions = array<i32: 1>} : vector<16x16xi32>
    %10 = vector.broadcast %4 : vector<16x1xi32> to vector<16x16xi32>
    %11 = arith.cmpi eq, %10, %9 : vector<16x16xi32>
    %12 = arith.extui %11 : vector<16x16xi1> to vector<16x16xi32>
    %13 = arith.sitofp %12 : vector<16x16xi32> to vector<16x16xf32>
    %14 = vector.broadcast %8 : vector<16x1xi32> to vector<16x16xi32>
    %15 = arith.cmpi eq, %14, %9 : vector<16x16xi32>
    %16 = arith.extui %15 : vector<16x16xi1> to vector<16x16xi32>
    %17 = arith.sitofp %16 : vector<16x16xi32> to vector<16x16xf32>
    %c0_2 = arith.constant 0 : index
    %c0_3 = arith.constant 0 : index
    %18 = vector.load %arg2[%c0_2, %c0_3] : memref<16x128xf32, #tpu.memory_space<vmem>>, vector<16x128xf32>
    %cst = arith.constant dense<0.000000e+00> : vector<16x128xf32>
    %19 = tpu.matmul %13, %18, %cst {dimension_numbers = #tpu.dot_dimension_numbers<[1], [0], [0], [1], [0, 0, 1, 1], [], []>} : vector<16x16xf32>, vector<16x128xf32>, vector<16x128xf32> -> vector<16x128xf32>
    %c0_4 = arith.constant 0 : index
    %c0_5 = arith.constant 0 : index
    %20 = vector.load %arg4[%c0_4, %c0_5] : memref<16x128xf32, #tpu.memory_space<vmem>>, vector<16x128xf32>
    tpu.vector_store %arg4[%c0_4, %c0_5], %19 {strides = array<i32>} : memref<16x128xf32, #tpu.memory_space<vmem>>, vector<16x128xf32>,
    %c0_6 = arith.constant 0 : index
    %c0_7 = arith.constant 0 : index
    %21 = vector.load %arg3[%c0_6, %c0_7] : memref<16x128xf32, #tpu.memory_space<vmem>>, vector<16x128xf32>
    %cst_8 = arith.constant dense<0.000000e+00> : vector<16x128xf32>
    %22 = tpu.matmul %17, %21, %cst_8 {dimension_numbers = #tpu.dot_dimension_numbers<[1], [0], [0], [1], [0, 0, 1, 1], [], []>} : vector<16x16xf32>, vector<16x128xf32>, vector<16x128xf32> -> vector<16x128xf32>
    %c0_9 = arith.constant 0 : index
    %c0_10 = arith.constant 0 : index
    %23 = vector.load %arg5[%c0_9, %c0_10] : memref<16x128xf32, #tpu.memory_space<vmem>>, vector<16x128xf32>
    tpu.vector_store %arg5[%c0_9, %c0_10], %22 {strides = array<i32>} : memref<16x128xf32, #tpu.memory_space<vmem>>, vector<16x128xf32>,
    return
  }
  func.func @transform_0(%arg0: i32) -> (i32, i32) {
    %c0_i32 = arith.constant 0 : i32
    %c0_i32_0 = arith.constant 0 : i32
    return %arg0, %c0_i32 : i32, i32
  }
  func.func @transform_1(%arg0: i32) -> (i32, i32) {
    %c0_i32 = arith.constant 0 : i32
    %c0_i32_0 = arith.constant 0 : i32
    %c0_i32_1 = arith.constant 0 : i32
    return %c0_i32, %c0_i32_0 : i32, i32
  }
  func.func @transform_2(%arg0: i32) -> (i32, i32) {
    %c0_i32 = arith.constant 0 : i32
    %c0_i32_0 = arith.constant 0 : i32
    %c0_i32_1 = arith.constant 0 : i32
    return %c0_i32, %c0_i32_0 : i32, i32
  }
  func.func @transform_3(%arg0: i32) -> (i32, i32) {
    %c0_i32 = arith.constant 0 : i32
    %c0_i32_0 = arith.constant 0 : i32
    return %arg0, %c0_i32 : i32, i32
  }
  func.func @transform_4(%arg0: i32) -> (i32, i32) {
    %c0_i32 = arith.constant 0 : i32
    %c0_i32_0 = arith.constant 0 : i32
    return %arg0, %c0_i32 : i32, i32
  }
}

</mosaic_0001>

<bundles_post_ra>
// kernel: tpu_custom_call.1
= control target key start
LH: loop header
LB: loop body
LE: loop exit
PB: predicated region body
PF: predicated region fallthrough
CT: control target
= control target key end

     0   :  { %10 = vsyncpa [#allocation3], 0  ;;  %s484_s0 = inlined_call_operand.vmem [shape: s32[16,1], index: 0, kind: input, shape index: {}]   ;;  %s485_s1 = inlined_call_operand.vmem [shape: f32[16,128], index: 1, kind: input, shape index: {}]   ;;  %s486_s2 = inlined_call_operand.hbm [shape: f32[16,128], index: 2, kind: input, shape index: {}]   ;;  %s487_s3 = inlined_call_operand.hbm [shape: f32[16,128], index: 3, kind: output, shape index: {0}]   ;;  %s488_s4 = inlined_call_operand.hbm [shape: f32[16,128], index: 4, kind: output, shape index: {1}]  }
   0x1   :  { %11 = vsyncpa [#allocation4], 0 }
   0x2   :  { %12 = vsyncpa [#allocation7], 0  ;;  %s395_s15 = smov [#allocation2]   ;;  %s323_s19 = scalar_lea.hbm %s486_s2, 256 }
   0x3   :  { %s22_s16 = sshll.u32 %s395_s15, 4  ;;  %p324_p0 = scmp.ne.s32.totalorder %s486_s2, %s323_s19  ;;  %s23_s16 = int_to_ptr.vmem [resolvable:$true] %s22_s16 }
   0x4   :  { %p327_p1 = scmp.lt.u32.totalorder %s323_s19, %s486_s2 }
   0x6   :  { %p329_p2 = pnand %p327_p1, %p324_p0 }
   0x8   :  { %332 = shalt.err (!%p329_p2)
}
   0x9   :  { %s333_s24 = scalar_lea.vmem %s23_s16, 256  ;;  %p338_p4 = scmp.lt.s32.totalorder %s23_s16, %s23_s16 }
   0xa   :  { %p334_p3 = scmp.ne.s32.totalorder %s23_s16, %s333_s24  ;;  %p339_p5 = scmp.lt.s32.totalorder %s333_s24, %s333_s24 }
   0xc   :  { %p340_p6 = por %p339_p5, %p338_p4 }
   0xe   :  { %p341_p7 = pnand %p340_p6, %p334_p3 }
  0x10   :  { %344 = shalt.err (!%p341_p7)
}
  0x11   :  { %s396_s25 = smov 128   ;;  %s397_s26 = smov 8  }
  0x12   :  { %28 = dma.hbm_to_vmem [thread:$0]  %s486_s2, 256, %s23_s16, [#allocation3], %s396_s25, %s396_s25, %s397_s26  }
  0x13   :  { %389 = dma.done.wait [#allocation3], 256  }
  0x14   :  { %390 = vsyncadd [#allocation3], 4294967040  ;;  %v398_v0 = vmov 0   ;;  %v33_v1 = vld [vmem:[%s484_s0 + $0x8] sm:$0xff]  ;;  %v32_v2 = vld [vmem:[%s484_s0] sm:$0xff]  ;;  %v46_v15 = vlaneseq  ;;  %vm74_vm6 = vcmask 130048  }
  0x15   :  { %322 = vset.pattern.permute.xlu1 %v398_v0  ;;  %321 = vset.pattern.permute.xlu0 %v398_v0  ;;  %v72_v3 = vld [vmem:[%s485_s1] sm:$0xff]  ;;  %vm36_vm0 = vcmp.gt.s32.totalorder %v33_v1, 0  ;;  %vm34_vm1 = vcmp.gt.s32.totalorder %v32_v2, 0  ;;  %v73_v4 = vld [vmem:[%s485_s1 + $0x8] sm:$0xff]  ;;  %v399_v19 = vmov 0.0   ;;  %s400_s0 = smov [#allocation5]  }
  0x16   :  { %v37_v5 = vsel %vm36_vm0, %v33_v1, 0  ;;  %v35_v6 = vsel %vm34_vm1, %v32_v2, 0  ;;  %v306_v7 = vpack.c.bf16 %v73_v4, %v72_v3  ;;  %v158_v10 = vld [vmem:[#allocation2] sm:$0xff]  ;;  %v159_v11 = vld [vmem:[#allocation2 + $0x8] sm:$0xff]  ;;  %v47_v16 = vand.u32 127, %v46_v15  ;;  %s248_s1 = sshll.u32 %s400_s0, 4  ;;  %s249_s1 = int_to_ptr.vmem [resolvable:$true] %s248_s1 }
  0x17   :  { %vm40_vm2 = vcmp.lt.s32.totalorder %v37_v5, 8  ;;  %vm38_vm3 = vcmp.lt.s32.totalorder %v35_v6, 8  ;;  %vm44_vm4 = vcmp.lt.s32.totalorder %v37_v5, 7  ;;  %vm42_vm5 = vcmp.lt.s32.totalorder %v35_v6, 7  ;;  %s401_s10 = smov [#allocation6]   ;;  %s345_s12 = scalar_lea.vmem %s249_s1, 256 }
  0x18   :  { %v41_v8 = vsel %vm40_vm2, %v37_v5, 8  ;;  %v39_v9 = vsel %vm38_vm3, %v35_v6, 8  ;;  %307 = vmatprep.subr.bf16.mxu0 %v306_v7  ;;  %v45_v12 = vsel %vm44_vm4, %v37_v5, 7  ;;  %v43_v13 = vsel %vm42_vm5, %v35_v6, 7  ;;  %s260_s11 = sshll.u32 %s401_s10, 4  ;;  %p346_p8 = scmp.ne.s32.totalorder %s249_s1, %s345_s12  ;;  %s261_s11 = int_to_ptr.vmem [resolvable:$true] %s260_s11 }
  0x19   :  { %52 = vperm.xlu1 %322, %v41_v8   ;;  %49 = vperm.xlu0 %321, %v39_v9   ;;  %v310_v14 = vpack.c.bf16 %v159_v11, %v158_v10  ;;  %p350_p9 = scmp.lt.s32.totalorder %s249_s1, %s249_s1  ;;  %p351_p10 = scmp.lt.s32.totalorder %s345_s12, %s345_s12 }
  0x1a   :  { %309 = vmatpush3.bf16.msra.mxu0 %v306_v7 }
  0x1b   :  { %311 = vmatprep.subr.bf16.mxu1 %v310_v14  ;;  %p352_p11 = por %p351_p10, %p350_p9 }
  0x1c   :  { %313 = vmatpush3.bf16.msra.mxu1 %v310_v14 }
  0x1d   :  { %64 = vperm.xlu1 %322, %v45_v12   ;;  %61 = vperm.xlu0 %321, %v43_v13   ;;  %p353_p12 = pnand %p352_p11, %p346_p8 }
  0x98   :  { %v53_v17 = vpop.permute.xlu1 %52  ;;  %v50_v18 = vpop.permute.xlu0 %49 }
  0x99   :  { %vm55_vm7 = vcmp.eq.s32.totalorder %v53_v17, %v47_v16  ;;  %vm54_vm8 = vcmp.eq.s32.totalorder %v50_v18, %v47_v16 }
  0x9a   :  { %v277_v20 = vsel %vm55_vm7, 1.0, %v399_v19  ;;  %v276_v21 = vsel %vm54_vm8, 1.0, %v399_v19 }
  0x9b   :  { %296 = vmatprep.mubr.msk.f32.mxu0 %vm74_vm6, %v276_v21 }
  0x9c   :  { %v65_v22 = vpop.permute.xlu1 %64  ;;  %297 = vmatmul.mubr.msk.f32.vlgmr.msra.gmra.mrb[0].mxu0 %vm74_vm6, %v277_v20  ;;  %v62_v23 = vpop.permute.xlu0 %61 }
  0x9d   :  { %vm67_vm9 = vcmp.eq.s32.totalorder %v65_v22, %v47_v16  ;;  %vm66_vm10 = vcmp.eq.s32.totalorder %v62_v23, %v47_v16 }
  0x9e   :  { %v279_v24 = vsel %vm67_vm9, 1.0, %v399_v19  ;;  %v278_v25 = vsel %vm66_vm10, 1.0, %v399_v19 }
  0x9f   :  { %303 = vmatprep.mubr.msk.f32.mxu1 %vm74_vm6, %v278_v25 }
  0xa0   :  { %304 = vmatmul.mubr.msk.f32.vlgmr.msra.gmra.mrb[0].mxu1 %vm74_vm6, %v279_v24 }
 0x16f   :  { %v298_v26 = vpop.f32.mrb[0].mxu0 }
 0x170   :  { %157 = vst [vmem:[#allocation5 + $0x8] sm:$0xff] %v298_v26  ;;  %v147_v27 = vpop.f32.mrb[1].mxu0 }
 0x171   :  { %156 = vst [vmem:[#allocation5] sm:$0xff] %v147_v27 }
 0x172   :  { %356 = shalt.err (!%p353_p12)
}
 0x173   :  { %s357_s15 = scalar_lea.hbm %s487_s3, 256 }
 0x174   :  { %p358_p13 = scmp.ne.s32.totalorder %s487_s3, %s357_s15  ;;  %p361_p0 = scmp.lt.u32.totalorder %s357_s15, %s487_s3 }
 0x176   :  { %p363_p1 = pnand %p361_p0, %p358_p13 }
 0x178   :  { %366 = shalt.err (!%p363_p1)
}
 0x179   :  { %254 = dma.vmem_to_hbm [thread:$0]  %s249_s1, 256, %s487_s3, [#allocation4], %s396_s25, %s396_s25, %s397_s26   ;;  %v305_v28 = vpop.f32.mrb[0].mxu1 }
 0x17a   :  { %242 = vst [vmem:[#allocation6 + $0x8] sm:$0xff] %v305_v28  ;;  %v232_v29 = vpop.f32.mrb[1].mxu1  ;;  %s367_s22 = scalar_lea.vmem %s261_s11, 256  ;;  %p372_p3 = scmp.lt.s32.totalorder %s261_s11, %s261_s11 }
 0x17b   :  { %241 = vst [vmem:[#allocation6] sm:$0xff] %v232_v29  ;;  %p368_p2 = scmp.ne.s32.totalorder %s261_s11, %s367_s22  ;;  %p373_p4 = scmp.lt.s32.totalorder %s367_s22, %s367_s22 }
 0x17d   :  { %p374_p5 = por %p373_p4, %p372_p3 }
 0x17f   :  { %p375_p6 = pnand %p374_p5, %p368_p2 }
 0x181   :  { %378 = shalt.err (!%p375_p6)
}
 0x182   :  { %s379_s27 = scalar_lea.hbm %s488_s4, 256 }
 0x183   :  { %p380_p7 = scmp.ne.s32.totalorder %s488_s4, %s379_s27  ;;  %p383_p8 = scmp.lt.u32.totalorder %s379_s27, %s488_s4 }
 0x185   :  { %p385_p9 = pnand %p383_p8, %p380_p7 }
 0x187   :  { %388 = shalt.err (!%p385_p9)
}
 0x188   :  { %266 = dma.vmem_to_hbm [thread:$0]  %s261_s11, 256, %s488_s4, [#allocation7], %s396_s25, %s396_s25, %s397_s26  }
 0x189   :  { %391 = dma.done.wait [#allocation4], 256  }
 0x18a   :  { %392 = vsyncadd [#allocation4], 4294967040 }
 0x18b   :  { %393 = dma.done.wait [#allocation7], 256  }
 0x18c   :  { %394 = vsyncadd [#allocation7], 4294967040 }
 0x18d   :  { %273 = vsyncpa [#allocation3], 1 }
 0x18e   :  { %274 = vsyncpa [#allocation4], 1 }
 0x18f   :  { %275 = vsyncpa [#allocation7], 1 }

</bundles_post_ra>
